<compile_context>
chip_gen: v5e
topology: v5e:2x2
jax: 0.10.0
libtpu: 0.0.40
codegen_flags: <defaults>
</compile_context>

<pallas_src>
import functools

import jax
import jax.numpy as jnp
from jax.experimental import pallas as pl
from jax.experimental.pallas import tpu as pltpu


def _round_up(x, m):
    return m * ((x + m - 1) // m)


def _mlp_kernel(x_ref, w_ref, b_ref, o_ref, *, num_layers, in_size, feat):
    """num_layers x (matmul + bias) with ReLU between layers; weights resident in VMEM."""
    feat_out = o_ref.shape[-1]
    h = x_ref[...]                                           # (tb, in_size) f32
    for i in range(num_layers):                              # static unroll (7 layers)
        row_hi = in_size if i == 0 else feat                 # first layer: true K
        col_hi = feat_out if i == num_layers - 1 else feat   # last layer: padded-out width only
        w = w_ref[i, :row_hi, :col_hi]
        # Dot operands take the weight dtype (bf16 by default, MXU-native);
        # accumulation, bias-add and ReLU stay f32 (VPU-friendly on every gen).
        h = jnp.dot(h.astype(w_ref.dtype), w, preferred_element_type=jnp.float32)
        h = h + b_ref[i, :, :col_hi]
        if i < num_layers - 1:
            h = jnp.maximum(h, 0.0)                          # ReLU (dropout = identity)
    # TODO(synk): training-mode dropout (p=0.35 / p=0.55) would need
    # pltpu.prng_seed / pltpu.prng_random_bits masking; eval-mode is identity.
    o_ref[...] = h.astype(o_ref.dtype)


def pack_params(params, *, use_bf16=True):
    """Pack PyTorch-layout [(W (out,in), b (out,)), ...] into padded slabs.

    Call ONCE at parameter-init time (not per forward): the 7 transposes /
    dynamic-update-slices are hoisted out of the per-step work.
    """
    num_layers = len(params)
    in_size = int(params[0][0].shape[1])
    out_size = int(params[-1][0].shape[0])
    dims = [in_size] + [int(w.shape[0]) for w, _ in params]
    feat = _round_up(max(dims), 128)
    w_dtype = jnp.bfloat16 if use_bf16 else jnp.float32

    w_slab = jnp.zeros((num_layers, feat, feat), w_dtype)
    b_slab = jnp.zeros((num_layers, 1, feat), jnp.float32)
    for i, (w, b) in enumerate(params):
        wt = jnp.asarray(w, jnp.float32).T                   # (in_i, out_i)
        w_slab = w_slab.at[i, : wt.shape[0], : wt.shape[1]].set(wt.astype(w_dtype))
        b_slab = b_slab.at[i, 0, : b.shape[0]].set(jnp.asarray(b, jnp.float32))

    flops_per_row = 2 * sum(int(w.shape[0]) * int(w.shape[1]) for w, _ in params)
    return dict(w=w_slab, b=b_slab, in_size=in_size, out_size=out_size,
                feat=feat, num_layers=num_layers, flops_per_row=flops_per_row)


def advanced_nn_forward(x, packed, *, block_batch=2048, out_dtype=jnp.float32):
    """Forward pass. `packed` comes from pack_params(); x is (batch, in_size)."""
    x = jnp.asarray(x, jnp.float32)
    batch, in_size = x.shape
    assert in_size == packed["in_size"], "input width mismatch with packed params"

    w_slab, b_slab = packed["w"], packed["b"]
    feat = packed["feat"]
    num_layers = packed["num_layers"]
    out_size = packed["out_size"]
    feat_out = _round_up(out_size, 128)                      # lane-dense output width
    out_itemsize = jnp.dtype(out_dtype).itemsize

    # Batch tile: as large as requested, but capped at ceil(batch/2) (rounded
    # to the 8-sublane granule) so the grid has >= 2 steps and both v7x
    # TensorCores participate via dimension_semantics=("parallel",).
    half = _round_up(-(-batch // 2), 8)
    tb = max(8, min(_round_up(block_batch, 8), half))
    grid = (pl.cdiv(batch, tb),)

    # Scoped-VMEM budget: double-buffered x/out tiles + resident slabs
    # (double-buffered by default) + intermediate activations, clamped to the
    # v7x-safe range.  (Single-buffering the constant-index slabs via
    # pipeline_mode=pl.Buffered(1) would save <0.5 MiB at feat=128 — skipped.)
    need = (2 * tb * in_size * 4
            + 2 * tb * feat_out * out_itemsize
            + 2 * (w_slab.size * w_slab.dtype.itemsize + b_slab.size * 4)
            + 4 * tb * feat * 4
            + (1 << 20))
    vmem_limit = int(max(32 << 20, min(_round_up(need, 1 << 20), 48 << 20)))

    flops = packed["flops_per_row"] * batch
    bytes_accessed = int(x.size * 4
                         + w_slab.size * w_slab.dtype.itemsize
                         + b_slab.size * 4
                         + batch * feat_out * out_itemsize)

    out = pl.pallas_call(
        functools.partial(_mlp_kernel, num_layers=num_layers,
                          in_size=in_size, feat=feat),
        out_shape=jax.ShapeDtypeStruct((batch, feat_out), out_dtype),
        grid=grid,
        in_specs=[
            pl.BlockSpec((tb, in_size), lambda i: (i, 0)),                  # x tile (unpadded)
            pl.BlockSpec((num_layers, feat, feat), lambda i: (0, 0, 0)),    # weights (resident)
            pl.BlockSpec((num_layers, 1, feat), lambda i: (0, 0, 0)),       # biases (resident)
        ],
        out_specs=pl.BlockSpec((tb, feat_out), lambda i: (i, 0)),
        compiler_params=pltpu.CompilerParams(
            dimension_semantics=("parallel",),
            vmem_limit_bytes=vmem_limit,
        ),
        cost_estimate=pl.CostEstimate(
            flops=flops, transcendentals=0, bytes_accessed=bytes_accessed),
    )(x, w_slab, b_slab)

    return out[:, :out_size]


def make_params(key, sizes):
    """Deterministic nn.Linear-style params; sizes = [in, h1..h6, out]."""
    params = []
    for i in range(len(sizes) - 1):
        fan_in, fan_out = sizes[i], sizes[i + 1]
        key, kw, kb = jax.random.split(key, 3)
        bound = float(fan_in) ** -0.5
        w = jax.random.uniform(kw, (fan_out, fan_in), jnp.float32, -bound, bound)
        b = jax.random.uniform(kb, (fan_out,), jnp.float32, -bound, bound)
        params.append((w, b))
    return params


def reference_forward(x, params, w_dtype=jnp.float32):
    """Pure-JAX reference (eval-mode dropout = identity)."""
    h = x
    for i, (w, b) in enumerate(params):
        h = jnp.dot(h.astype(w_dtype), w.T.astype(w_dtype),
                    preferred_element_type=jnp.float32) + b
        if i < len(params) - 1:
            h = jnp.maximum(h, 0.0)
    return h


if __name__ == "__main__":
    key = jax.random.PRNGKey(0)
    # input_size=32, hidden1..6 = 64, 48, 64, 32, 64, 48, output_size=16
    sizes = [32, 64, 48, 64, 32, 64, 48, 16]
    kx, kp, kx2 = jax.random.split(key, 3)
    params = make_params(kp, sizes)

    packed_bf16 = pack_params(params, use_bf16=True)      # default (MXU-native) path
    packed_f32 = pack_params(params, use_bf16=False)      # strict-f32 path

    # Small-batch f32 check (single grid step).
    x = jax.random.normal(kx, (8, sizes[0]), jnp.float32)
    out = jax.block_until_ready(advanced_nn_forward(x, packed_f32))
    ref = reference_forward(x, params)
    assert out.shape == (8, sizes[-1])
    assert jnp.allclose(out, ref, atol=2e-4, rtol=2e-4), "f32 mismatch vs reference"

    # bf16-weight default path, vs a reference that applies the same
    # bf16-operand rounding with f32 accumulation.
    out_bf = jax.block_until_ready(advanced_nn_forward(x, packed_bf16))
    ref_bf = reference_forward(x, params, w_dtype=jnp.bfloat16)
    assert jnp.allclose(out_bf, ref_bf, atol=3e-2, rtol=3e-2), "bf16 path mismatch"

    # Larger batch: 4-step "parallel" grid with a partial last tile
    # (200 rows, 64-row tile) — exercises the no-x-pad / pl.cdiv path.
    xb = jax.random.normal(kx2, (200, sizes[0]), jnp.float32)
    out_b = jax.block_until_ready(
        advanced_nn_forward(xb, packed_bf16, block_batch=64))
    ref_b = reference_forward(xb, params, w_dtype=jnp.bfloat16)
    assert out_b.shape == (200, sizes[-1])
    assert jnp.allclose(out_b, ref_b, atol=3e-2, rtol=3e-2), "grid path mismatch"

    print("KERNEL_OK")
</pallas_src>

<mosaic_0001>
module attributes {stable_mosaic.version = 11 : i64} {
  func.func @_mlp_kernel(%arg0: i32, %arg1: memref<8x32xf32, #tpu.memory_space<vmem>>, %arg2: memref<7x128x128xf32, #tpu.memory_space<vmem>>, %arg3: memref<7x1x128xf32, #tpu.memory_space<vmem>>, %arg4: memref<8x128xf32, #tpu.memory_space<vmem>>) attributes {dimension_semantics = [#tpu.dimension_semantics<parallel>], iteration_bounds = array<i64: 1>, scalar_prefetch = 0 : i64, scratch_operands = 0 : i64, tpu.core_type = #tpu.core_type<tc>, window_params = [{transform_indices = @transform_0, window_bounds = array<i64: 8, 32>}, {pipeline_mode = #tpu.pipeline_mode<synchronous>, transform_indices = @transform_1, window_bounds = array<i64: 7, 128, 128>}, {pipeline_mode = #tpu.pipeline_mode<synchronous>, transform_indices = @transform_2, window_bounds = array<i64: 7, 1, 128>}, {transform_indices = @transform_3, window_bounds = array<i64: 8, 128>}]} {
    %c0 = arith.constant 0 : index
    %c0_0 = arith.constant 0 : index
    %0 = vector.load %arg1[%c0, %c0_0] : memref<8x32xf32, #tpu.memory_space<vmem>>, vector<8x32xf32>
    %c0_1 = arith.constant 0 : index
    %c0_2 = arith.constant 0 : index
    %c0_3 = arith.constant 0 : index
    %1 = vector.load %arg2[%c0_1, %c0_2, %c0_3] : memref<7x128x128xf32, #tpu.memory_space<vmem>>, vector<1x32x128xf32>
    %2 = vector.shape_cast %1 : vector<1x32x128xf32> to vector<32x128xf32>
    %cst = arith.constant dense<0.000000e+00> : vector<8x128xf32>
    %3 = tpu.matmul %0, %2, %cst {dimension_numbers = #tpu.dot_dimension_numbers<[1], [0], [0], [1], [0, 0, 1, 1], [], []>} : vector<8x32xf32>, vector<32x128xf32>, vector<8x128xf32> -> vector<8x128xf32>
    %c0_4 = arith.constant 0 : index
    %c0_5 = arith.constant 0 : index
    %c0_6 = arith.constant 0 : index
    %4 = vector.load %arg3[%c0_4, %c0_5, %c0_6] : memref<7x1x128xf32, #tpu.memory_space<vmem>>, vector<1x1x128xf32>
    %5 = vector.shape_cast %4 : vector<1x1x128xf32> to vector<1x128xf32>
    %6 = vector.broadcast %5 : vector<1x128xf32> to vector<8x128xf32>
    %7 = arith.addf %3, %6 : vector<8x128xf32>
    %cst_7 = arith.constant 0.000000e+00 : f32
    %8 = vector.broadcast %cst_7 : f32 to vector<8x128xf32>
    %9 = arith.maximumf %7, %8 : vector<8x128xf32>
    %c1 = arith.constant 1 : index
    %c0_8 = arith.constant 0 : index
    %c0_9 = arith.constant 0 : index
    %10 = vector.load %arg2[%c1, %c0_8, %c0_9] : memref<7x128x128xf32, #tpu.memory_space<vmem>>, vector<1x128x128xf32>
    %11 = vector.shape_cast %10 : vector<1x128x128xf32> to vector<128x128xf32>
    %cst_10 = arith.constant dense<0.000000e+00> : vector<8x128xf32>
    %12 = tpu.matmul %9, %11, %cst_10 {dimension_numbers = #tpu.dot_dimension_numbers<[1], [0], [0], [1], [0, 0, 1, 1], [], []>} : vector<8x128xf32>, vector<128x128xf32>, vector<8x128xf32> -> vector<8x128xf32>
    %c1_11 = arith.constant 1 : index
    %c0_12 = arith.constant 0 : index
    %c0_13 = arith.constant 0 : index
    %13 = vector.load %arg3[%c1_11, %c0_12, %c0_13] : memref<7x1x128xf32, #tpu.memory_space<vmem>>, vector<1x1x128xf32>
    %14 = vector.shape_cast %13 : vector<1x1x128xf32> to vector<1x128xf32>
    %15 = vector.broadcast %14 : vector<1x128xf32> to vector<8x128xf32>
    %16 = arith.addf %12, %15 : vector<8x128xf32>
    %cst_14 = arith.constant 0.000000e+00 : f32
    %17 = vector.broadcast %cst_14 : f32 to vector<8x128xf32>
    %18 = arith.maximumf %16, %17 : vector<8x128xf32>
    %c2 = arith.constant 2 : index
    %c0_15 = arith.constant 0 : index
    %c0_16 = arith.constant 0 : index
    %19 = vector.load %arg2[%c2, %c0_15, %c0_16] : memref<7x128x128xf32, #tpu.memory_space<vmem>>, vector<1x128x128xf32>
    %20 = vector.shape_cast %19 : vector<1x128x128xf32> to vector<128x128xf32>
    %cst_17 = arith.constant dense<0.000000e+00> : vector<8x128xf32>
    %21 = tpu.matmul %18, %20, %cst_17 {dimension_numbers = #tpu.dot_dimension_numbers<[1], [0], [0], [1], [0, 0, 1, 1], [], []>} : vector<8x128xf32>, vector<128x128xf32>, vector<8x128xf32> -> vector<8x128xf32>
    %c2_18 = arith.constant 2 : index
    %c0_19 = arith.constant 0 : index
    %c0_20 = arith.constant 0 : index
    %22 = vector.load %arg3[%c2_18, %c0_19, %c0_20] : memref<7x1x128xf32, #tpu.memory_space<vmem>>, vector<1x1x128xf32>
    %23 = vector.shape_cast %22 : vector<1x1x128xf32> to vector<1x128xf32>
    %24 = vector.broadcast %23 : vector<1x128xf32> to vector<8x128xf32>
    %25 = arith.addf %21, %24 : vector<8x128xf32>
    %cst_21 = arith.constant 0.000000e+00 : f32
    %26 = vector.broadcast %cst_21 : f32 to vector<8x128xf32>
    %27 = arith.maximumf %25, %26 : vector<8x128xf32>
    %c3 = arith.constant 3 : index
    %c0_22 = arith.constant 0 : index
    %c0_23 = arith.constant 0 : index
    %28 = vector.load %arg2[%c3, %c0_22, %c0_23] : memref<7x128x128xf32, #tpu.memory_space<vmem>>, vector<1x128x128xf32>
    %29 = vector.shape_cast %28 : vector<1x128x128xf32> to vector<128x128xf32>
    %cst_24 = arith.constant dense<0.000000e+00> : vector<8x128xf32>
    %30 = tpu.matmul %27, %29, %cst_24 {dimension_numbers = #tpu.dot_dimension_numbers<[1], [0], [0], [1], [0, 0, 1, 1], [], []>} : vector<8x128xf32>, vector<128x128xf32>, vector<8x128xf32> -> vector<8x128xf32>
    %c3_25 = arith.constant 3 : index
    %c0_26 = arith.constant 0 : index
    %c0_27 = arith.constant 0 : index
    %31 = vector.load %arg3[%c3_25, %c0_26, %c0_27] : memref<7x1x128xf32, #tpu.memory_space<vmem>>, vector<1x1x128xf32>
    %32 = vector.shape_cast %31 : vector<1x1x128xf32> to vector<1x128xf32>
    %33 = vector.broadcast %32 : vector<1x128xf32> to vector<8x128xf32>
    %34 = arith.addf %30, %33 : vector<8x128xf32>
    %cst_28 = arith.constant 0.000000e+00 : f32
    %35 = vector.broadcast %cst_28 : f32 to vector<8x128xf32>
    %36 = arith.maximumf %34, %35 : vector<8x128xf32>
    %c4 = arith.constant 4 : index
    %c0_29 = arith.constant 0 : index
    %c0_30 = arith.constant 0 : index
    %37 = vector.load %arg2[%c4, %c0_29, %c0_30] : memref<7x128x128xf32, #tpu.memory_space<vmem>>, vector<1x128x128xf32>
    %38 = vector.shape_cast %37 : vector<1x128x128xf32> to vector<128x128xf32>
    %cst_31 = arith.constant dense<0.000000e+00> : vector<8x128xf32>
    %39 = tpu.matmul %36, %38, %cst_31 {dimension_numbers = #tpu.dot_dimension_numbers<[1], [0], [0], [1], [0, 0, 1, 1], [], []>} : vector<8x128xf32>, vector<128x128xf32>, vector<8x128xf32> -> vector<8x128xf32>
    %c4_32 = arith.constant 4 : index
    %c0_33 = arith.constant 0 : index
    %c0_34 = arith.constant 0 : index
    %40 = vector.load %arg3[%c4_32, %c0_33, %c0_34] : memref<7x1x128xf32, #tpu.memory_space<vmem>>, vector<1x1x128xf32>
    %41 = vector.shape_cast %40 : vector<1x1x128xf32> to vector<1x128xf32>
    %42 = vector.broadcast %41 : vector<1x128xf32> to vector<8x128xf32>
    %43 = arith.addf %39, %42 : vector<8x128xf32>
    %cst_35 = arith.constant 0.000000e+00 : f32
    %44 = vector.broadcast %cst_35 : f32 to vector<8x128xf32>
    %45 = arith.maximumf %43, %44 : vector<8x128xf32>
    %c5 = arith.constant 5 : index
    %c0_36 = arith.constant 0 : index
    %c0_37 = arith.constant 0 : index
    %46 = vector.load %arg2[%c5, %c0_36, %c0_37] : memref<7x128x128xf32, #tpu.memory_space<vmem>>, vector<1x128x128xf32>
    %47 = vector.shape_cast %46 : vector<1x128x128xf32> to vector<128x128xf32>
    %cst_38 = arith.constant dense<0.000000e+00> : vector<8x128xf32>
    %48 = tpu.matmul %45, %47, %cst_38 {dimension_numbers = #tpu.dot_dimension_numbers<[1], [0], [0], [1], [0, 0, 1, 1], [], []>} : vector<8x128xf32>, vector<128x128xf32>, vector<8x128xf32> -> vector<8x128xf32>
    %c5_39 = arith.constant 5 : index
    %c0_40 = arith.constant 0 : index
    %c0_41 = arith.constant 0 : index
    %49 = vector.load %arg3[%c5_39, %c0_40, %c0_41] : memref<7x1x128xf32, #tpu.memory_space<vmem>>, vector<1x1x128xf32>
    %50 = vector.shape_cast %49 : vector<1x1x128xf32> to vector<1x128xf32>
    %51 = vector.broadcast %50 : vector<1x128xf32> to vector<8x128xf32>
    %52 = arith.addf %48, %51 : vector<8x128xf32>
    %cst_42 = arith.constant 0.000000e+00 : f32
    %53 = vector.broadcast %cst_42 : f32 to vector<8x128xf32>
    %54 = arith.maximumf %52, %53 : vector<8x128xf32>
    %c6 = arith.constant 6 : index
    %c0_43 = arith.constant 0 : index
    %c0_44 = arith.constant 0 : index
    %55 = vector.load %arg2[%c6, %c0_43, %c0_44] : memref<7x128x128xf32, #tpu.memory_space<vmem>>, vector<1x128x128xf32>
    %56 = vector.shape_cast %55 : vector<1x128x128xf32> to vector<128x128xf32>
    %cst_45 = arith.constant dense<0.000000e+00> : vector<8x128xf32>
    %57 = tpu.matmul %54, %56, %cst_45 {dimension_numbers = #tpu.dot_dimension_numbers<[1], [0], [0], [1], [0, 0, 1, 1], [], []>} : vector<8x128xf32>, vector<128x128xf32>, vector<8x128xf32> -> vector<8x128xf32>
    %c6_46 = arith.constant 6 : index
    %c0_47 = arith.constant 0 : index
    %c0_48 = arith.constant 0 : index
    %58 = vector.load %arg3[%c6_46, %c0_47, %c0_48] : memref<7x1x128xf32, #tpu.memory_space<vmem>>, vector<1x1x128xf32>
    %59 = vector.shape_cast %58 : vector<1x1x128xf32> to vector<1x128xf32>
    %60 = vector.broadcast %59 : vector<1x128xf32> to vector<8x128xf32>
    %61 = arith.addf %57, %60 : vector<8x128xf32>
    %c0_49 = arith.constant 0 : index
    %c0_50 = arith.constant 0 : index
    %62 = vector.load %arg4[%c0_49, %c0_50] : memref<8x128xf32, #tpu.memory_space<vmem>>, vector<8x128xf32>
    tpu.vector_store %arg4[%c0_49, %c0_50], %61 {strides = array<i32>} : memref<8x128xf32, #tpu.memory_space<vmem>>, vector<8x128xf32>,
    return
  }
  func.func @transform_0(%arg0: i32) -> (i32, i32) {
    %c0_i32 = arith.constant 0 : i32
    %c0_i32_0 = arith.constant 0 : i32
    return %arg0, %c0_i32 : i32, i32
  }
  func.func @transform_1(%arg0: i32) -> (i32, i32, i32) {
    %c0_i32 = arith.constant 0 : i32
    %c0_i32_0 = arith.constant 0 : i32
    %c0_i32_1 = arith.constant 0 : i32
    %c0_i32_2 = arith.constant 0 : i32
    return %c0_i32, %c0_i32_0, %c0_i32_1 : i32, i32, i32
  }
  func.func @transform_2(%arg0: i32) -> (i32, i32, i32) {
    %c0_i32 = arith.constant 0 : i32
    %c0_i32_0 = arith.constant 0 : i32
    %c0_i32_1 = arith.constant 0 : i32
    %c0_i32_2 = arith.constant 0 : i32
    return %c0_i32, %c0_i32_0, %c0_i32_1 : i32, i32, i32
  }
  func.func @transform_3(%arg0: i32) -> (i32, i32) {
    %c0_i32 = arith.constant 0 : i32
    %c0_i32_0 = arith.constant 0 : i32
    return %arg0, %c0_i32 : i32, i32
  }
}

</mosaic_0001>

<bundles_post_ra>
// kernel: tpu_custom_call.1
= control target key start
LH: loop header
LB: loop body
LE: loop exit
PB: predicated region body
PF: predicated region fallthrough
CT: control target
= control target key end

     0   :  { %8 = vsyncpa [#allocation3], 0  ;;  %s528_s0 = inlined_call_operand.hbm [shape: f32[8,32], index: 0, kind: input, shape index: {}]   ;;  %s529_s1 = inlined_call_operand.hbm [shape: f32[7,128,128], index: 1, kind: input, shape index: {}]   ;;  %s530_s2 = inlined_call_operand.hbm [shape: f32[7,1,128], index: 2, kind: input, shape index: {}]   ;;  %s531_s3 = inlined_call_operand.hbm [shape: f32[8,128], index: 3, kind: output, shape index: {}]  }
   0x1   :  { %9 = vsyncpa [#allocation6], 0  ;;  %s26_s14 = sshll.u32 %s529_s1, 4  ;;  %s27_s14 = int_to_ptr.hbm [resolvable:$true] %s26_s14 }
   0x2   :  { %10 = vsyncpa [#allocation4], 0  ;;  %s488_s15 = smov [#allocation5]   ;;  %s16_s19 = sshll.u32 %s528_s0, 4  ;;  %s17_s19 = int_to_ptr.hbm [resolvable:$true] %s16_s19 }
   0x3   :  { %s28_s16 = sshll.u32 %s488_s15, 4  ;;  %s489_s20 = smov 128   ;;  %s29_s16 = int_to_ptr.vmem [resolvable:$true] %s28_s16 }
   0x4   :  { %s490_s21 = smov 8   ;;  %s491_s22 = smov [#allocation2]  }
   0x5   :  { %34 = dma.hbm_to_vmem [thread:$0]  %s27_s14, 14336, %s29_s16, [#allocation6], %s489_s20, %s489_s20, %s490_s21  }
   0x6   :  { %s18_s23 = sshll.u32 %s491_s22, 4  ;;  %s39_s26 = sshll.u32 %s530_s2, 4  ;;  %s19_s23 = int_to_ptr.vmem [resolvable:$true] %s18_s23  ;;  %s40_s26 = int_to_ptr.hbm [resolvable:$true] %s39_s26 }
   0x7   :  { %21 = dma.hbm_to_vmem [thread:$0]  %s17_s19, 128, %s19_s23, [#allocation3]  }
   0x8   :  { %s492_s1 = smov [#allocation7]   ;;  %s493_s28 = smov 16  }
   0x9   :  { %s41_s27 = sshll.u32 %s492_s1, 4  ;;  %s494_s29 = smov 1   ;;  %s42_s27 = int_to_ptr.vmem [resolvable:$true] %s41_s27 }
   0xa   :  { %47 = dma.hbm_to_vmem [thread:$0]  %s40_s26, 112, %s42_s27, [#allocation6], %s493_s28, %s493_s28, %s494_s29  }
   0xb   :  { %482 = dma.done.wait [#allocation3], 128  }
   0xc   :  { %483 = vsyncadd [#allocation3], 4294967168 }
   0xd   :  { %484 = dma.done.wait [#allocation6], 14448  }
   0xe   :  { %485 = vsyncadd [#allocation6], 4294952848  ;;  %v64_v0 = vld [vmem:[#allocation5 + $0x18] sm:$0xff]  ;;  %v63_v1 = vld [vmem:[#allocation5 + $0x10] sm:$0xff]  ;;  %vm69_vm0 = vcmask 261120   ;;  %s495_s0 = smov [#allocation8]  }
   0xf   :  { %85 = vmatpush.msra.mxu0 %v64_v0  ;;  %v110_v2 = vld [vmem:[#allocation5 + $0xf8] sm:$0xff]  ;;  %v62_v3 = vld [vmem:[#allocation5 + $0x8] sm:$0xff]  ;;  %v109_v4 = vld [vmem:[#allocation5 + $0xf0] sm:$0xff]  ;;  %s357_s2 = sshll.u32 %s495_s0, 4  ;;  %s359_s5 = sshll.u32 %s531_s3, 4  ;;  %s358_s2 = int_to_ptr.vmem [resolvable:$true] %s357_s2  ;;  %s360_s5 = int_to_ptr.hbm [resolvable:$true] %s359_s5 }
  0x10   :  { %116 = vmatpush.msra.mxu1 %v110_v2  ;;  %v108_v5 = vld [vmem:[#allocation5 + $0xe8] sm:$0xff]  ;;  %v61_v6 = vld [vmem:[#allocation5] sm:$0xff]  ;;  %v60_v7 = vld [vmem:[#allocation2] sm:$0xff] }
  0x11   :  { %86 = vmatpush.msra.mxu0 %v63_v1  ;;  %v107_v8 = vld [vmem:[#allocation5 + $0xe0] sm:$0xff]  ;;  %v106_v9 = vld [vmem:[#allocation5 + $0xd8] sm:$0xff]  ;;  %v105_v10 = vld [vmem:[#allocation5 + $0xd0] sm:$0xff] }
  0x12   :  { %117 = vmatpush.msra.mxu1 %v109_v4  ;;  %v104_v11 = vld [vmem:[#allocation5 + $0xc8] sm:$0xff]  ;;  %v103_v12 = vld [vmem:[#allocation5 + $0xc0] sm:$0xff]  ;;  %v102_v13 = vld [vmem:[#allocation5 + $0xb8] sm:$0xff] }
  0x13   :  { %87 = vmatpush.msra.mxu0 %v62_v3  ;;  %v101_v14 = vld [vmem:[#allocation5 + $0xb0] sm:$0xff]  ;;  %v100_v15 = vld [vmem:[#allocation5 + $0xa8] sm:$0xff]  ;;  %v99_v16 = vld [vmem:[#allocation5 + $0xa0] sm:$0xff] }
  0x14   :  { %118 = vmatpush.msra.mxu1 %v108_v5  ;;  %v98_v17 = vld [vmem:[#allocation5 + $0x98] sm:$0xff]  ;;  %v97_v18 = vld [vmem:[#allocation5 + $0x90] sm:$0xff]  ;;  %v96_v19 = vld [vmem:[#allocation5 + $0x88] sm:$0xff] }
  0x15   :  { %88 = vmatpush.msra.mxu0 %v61_v6  ;;  %v95_v20 = vld [vmem:[#allocation5 + $0x80] sm:$0xff]  ;;  %v153_v21 = vld [vmem:[#allocation5 + $0x178] sm:$0xff]  ;;  %v152_v22 = vld [vmem:[#allocation5 + $0x170] sm:$0xff] }
  0x16   :  { %370 = vmatmul.msk.f32.vlgmr.msra.gmra.mxu0 %vm69_vm0, %v60_v7  ;;  %119 = vmatpush.msra.mxu1 %v107_v8  ;;  %v151_v23 = vld [vmem:[#allocation5 + $0x168] sm:$0xff]  ;;  %v150_v24 = vld [vmem:[#allocation5 + $0x160] sm:$0xff]  ;;  %v149_v25 = vld [vmem:[#allocation5 + $0x158] sm:$0xff] }
  0x17   :  { %159 = vmatpush.msra.mxu2 %v153_v21  ;;  %v148_v26 = vld [vmem:[#allocation5 + $0x150] sm:$0xff]  ;;  %v147_v27 = vld [vmem:[#allocation5 + $0x148] sm:$0xff]  ;;  %v146_v28 = vld [vmem:[#allocation5 + $0x140] sm:$0xff] }
  0x18   :  { %120 = vmatpush.msra.mxu1 %v106_v9  ;;  %v145_v29 = vld [vmem:[#allocation5 + $0x138] sm:$0xff]  ;;  %v144_v30 = vld [vmem:[#allocation5 + $0x130] sm:$0xff]  ;;  %v143_v31 = vld [vmem:[#allocation5 + $0x128] sm:$0xff] }
  0x19   :  { %160 = vmatpush.msra.mxu2 %v152_v22  ;;  %v142_v32 = vld [vmem:[#allocation5 + $0x120] sm:$0xff]  ;;  %v141_v33 = vld [vmem:[#allocation5 + $0x118] sm:$0xff]  ;;  %v140_v38 = vld [vmem:[#allocation5 + $0x110] sm:$0xff] }
  0x1a   :  { %121 = vmatpush.msra.mxu1 %v105_v10  ;;  %v379_v34 = vld [vmem:[#allocation7] ss:$0 sm:$0xff]  ;;  %v139_v39 = vld [vmem:[#allocation5 + $0x108] sm:$0xff]  ;;  %v196_v41 = vld [vmem:[#allocation5 + $0x1f8] sm:$0xff] }
  0x1b   :  { %161 = vmatpush.msra.mxu2 %v151_v23  ;;  %v138_v40 = vld [vmem:[#allocation5 + $0x100] sm:$0xff]  ;;  %v195_v42 = vld [vmem:[#allocation5 + $0x1f0] sm:$0xff]  ;;  %202 = vmatpush.msra.mxu3 %v196_v41  ;;  %v194_v43 = vld [vmem:[#allocation5 + $0x1e8] sm:$0xff] }
  0x1c   :  { %122 = vmatpush.msra.mxu1 %v104_v11  ;;  %v193_v44 = vld [vmem:[#allocation5 + $0x1e0] sm:$0xff]  ;;  %v192_v45 = vld [vmem:[#allocation5 + $0x1d8] sm:$0xff]  ;;  %v191_v46 = vld [vmem:[#allocation5 + $0x1d0] sm:$0xff] }
  0x1d   :  { %162 = vmatpush.msra.mxu2 %v150_v24  ;;  %203 = vmatpush.msra.mxu3 %v195_v42  ;;  %v190_v47 = vld [vmem:[#allocation5 + $0x1c8] sm:$0xff]  ;;  %v189_v48 = vld [vmem:[#allocation5 + $0x1c0] sm:$0xff]  ;;  %v188_v49 = vld [vmem:[#allocation5 + $0x1b8] sm:$0xff] }
  0x1e   :  { %123 = vmatpush.msra.mxu1 %v103_v12  ;;  %v187_v50 = vld [vmem:[#allocation5 + $0x1b0] sm:$0xff]  ;;  %v186_v51 = vld [vmem:[#allocation5 + $0x1a8] sm:$0xff]  ;;  %v185_v52 = vld [vmem:[#allocation5 + $0x1a0] sm:$0xff] }
  0x1f   :  { %163 = vmatpush.msra.mxu2 %v149_v25  ;;  %204 = vmatpush.msra.mxu3 %v194_v43  ;;  %v184_v53 = vld [vmem:[#allocation5 + $0x198] sm:$0xff]  ;;  %v380_v54 = vld [vmem:[#allocation7 + $0x1] ss:$0 sm:$0xff]  ;;  %v183_v58 = vld [vmem:[#allocation5 + $0x190] sm:$0xff] }
  0x20   :  { %124 = vmatpush.msra.mxu1 %v102_v13  ;;  %v182_v59 = vld [vmem:[#allocation5 + $0x188] sm:$0xff]  ;;  %v181_v60 = vld [vmem:[#allocation5 + $0x180] sm:$0xff]  ;;  %v239_v61 = vld [vmem:[#allocation5 + $0x278] sm:$0xff] }
  0x21   :  { %164 = vmatpush.msra.mxu2 %v148_v26  ;;  %205 = vmatpush.msra.mxu3 %v193_v44  ;;  %v238_v62 = vld [vmem:[#allocation5 + $0x270] sm:$0xff]  ;;  %v237_v63 = vld [vmem:[#allocation5 + $0x268] sm:$0xff]  ;;  %v236_v0 = vld [vmem:[#allocation5 + $0x260] sm:$0xff] }
  0x22   :  { %125 = vmatpush.msra.mxu1 %v101_v14  ;;  %245 = vmatpush.msrb.mxu0 %v239_v61  ;;  %v235_v1 = vld [vmem:[#allocation5 + $0x258] sm:$0xff]  ;;  %v234_v2 = vld [vmem:[#allocation5 + $0x250] sm:$0xff]  ;;  %v233_v3 = vld [vmem:[#allocation5 + $0x248] sm:$0xff] }
  0x23   :  { %165 = vmatpush.msra.mxu2 %v147_v27  ;;  %206 = vmatpush.msra.mxu3 %v192_v45  ;;  %v232_v4 = vld [vmem:[#allocation5 + $0x240] sm:$0xff]  ;;  %v231_v5 = vld [vmem:[#allocation5 + $0x238] sm:$0xff]  ;;  %v230_v6 = vld [vmem:[#allocation5 + $0x230] sm:$0xff] }
  0x24   :  { %126 = vmatpush.msra.mxu1 %v100_v15  ;;  %246 = vmatpush.msrb.mxu0 %v238_v62  ;;  %v229_v7 = vld [vmem:[#allocation5 + $0x228] sm:$0xff]  ;;  %v228_v8 = vld [vmem:[#allocation5 + $0x220] sm:$0xff]  ;;  %v227_v9 = vld [vmem:[#allocation5 + $0x218] sm:$0xff] }
  0x25   :  { %166 = vmatpush.msra.mxu2 %v146_v28  ;;  %207 = vmatpush.msra.mxu3 %v191_v46  ;;  %v381_v10 = vld [vmem:[#allocation7 + $0x2] ss:$0 sm:$0xff]  ;;  %v226_v14 = vld [vmem:[#allocation5 + $0x210] sm:$0xff]  ;;  %v225_v15 = vld [vmem:[#allocation5 + $0x208] sm:$0xff] }
  0x26   :  { %127 = vmatpush.msra.mxu1 %v99_v16  ;;  %247 = vmatpush.msrb.mxu0 %v237_v63  ;;  %v224_v16 = vld [vmem:[#allocation5 + $0x200] sm:$0xff]  ;;  %v278_v21 = vld [vmem:[#allocation5 + $0x2d8] sm:$0xff]  ;;  %v277_v22 = vld [vmem:[#allocation5 + $0x2d0] sm:$0xff] }
  0x27   :  { %167 = vmatpush.msra.mxu2 %v145_v29  ;;  %208 = vmatpush.msra.mxu3 %v190_v47  ;;  %v276_v23 = vld [vmem:[#allocation5 + $0x2c8] sm:$0xff]  ;;  %v275_v24 = vld [vmem:[#allocation5 + $0x2c0] sm:$0xff]  ;;  %v274_v25 = vld [vmem:[#allocation5 + $0x2b8] sm:$0xff] }
  0x28   :  { %128 = vmatpush.msra.mxu1 %v98_v17  ;;  %248 = vmatpush.msrb.mxu0 %v236_v0  ;;  %v282_v17 = vld [vmem:[#allocation5 + $0x2f8] sm:$0xff]  ;;  %v273_v26 = vld [vmem:[#allocation5 + $0x2b0] sm:$0xff]  ;;  %v272_v27 = vld [vmem:[#allocation5 + $0x2a8] sm:$0xff] }
  0x29   :  { %168 = vmatpush.msra.mxu2 %v144_v30  ;;  %209 = vmatpush.msra.mxu3 %v189_v48  ;;  %v271_v28 = vld [vmem:[#allocation5 + $0x2a0] sm:$0xff]  ;;  %v270_v29 = vld [vmem:[#allocation5 + $0x298] sm:$0xff]  ;;  %v320_v42 = vld [vmem:[#allocation5 + $0x350] sm:$0xff] }
  0x2a   :  { %129 = vmatpush.msra.mxu1 %v97_v18  ;;  %249 = vmatpush.msrb.mxu0 %v235_v1  ;;  %v281_v18 = vld [vmem:[#allocation5 + $0x2f0] sm:$0xff]  ;;  %v382_v30 = vld [vmem:[#allocation7 + $0x3] ss:$0 sm:$0xff]  ;;  %v321_v41 = vld [vmem:[#allocation5 + $0x358] sm:$0xff] }
  0x2b   :  { %169 = vmatpush.msra.mxu2 %v143_v31  ;;  %210 = vmatpush.msra.mxu3 %v188_v49  ;;  %v319_v43 = vld [vmem:[#allocation5 + $0x348] sm:$0xff]  ;;  %v318_v44 = vld [vmem:[#allocation5 + $0x340] sm:$0xff]  ;;  %v317_v45 = vld [vmem:[#allocation5 + $0x338] sm:$0xff] }
  0x2c   :  { %130 = vmatpush.msra.mxu1 %v96_v19  ;;  %250 = vmatpush.msrb.mxu0 %v234_v2  ;;  %v280_v19 = vld [vmem:[#allocation5 + $0x2e8] sm:$0xff]  ;;  %v316_v46 = vld [vmem:[#allocation5 + $0x330] sm:$0xff]  ;;  %v314_v48 = vld [vmem:[#allocation5 + $0x320] sm:$0xff] }
  0x2d   :  { %170 = vmatpush.msra.mxu2 %v142_v32  ;;  %211 = vmatpush.msra.mxu3 %v187_v50  ;;  %v315_v47 = vld [vmem:[#allocation5 + $0x328] sm:$0xff]  ;;  %v313_v49 = vld [vmem:[#allocation5 + $0x318] sm:$0xff]  ;;  %v383_v50 = vld [vmem:[#allocation7 + $0x4] ss:$0 sm:$0xff] }
  0x2e   :  { %131 = vmatpush.msra.mxu1 %v95_v20  ;;  %251 = vmatpush.msrb.mxu0 %v233_v3  ;;  %v279_v20 = vld [vmem:[#allocation5 + $0x2e0] sm:$0xff] }
  0x2f   :  { %171 = vmatpush.msra.mxu2 %v141_v33  ;;  %212 = vmatpush.msra.mxu3 %v186_v51  ;;  %v385_v61 = vld [vmem:[#allocation7 + $0x6] ss:$0 sm:$0xff] }
  0x30   :  { %252 = vmatpush.msrb.mxu0 %v232_v4  ;;  %288 = vmatpush.msrb.mxu1 %v282_v17 }
  0x31   :  { %172 = vmatpush.msra.mxu2 %v140_v38  ;;  %213 = vmatpush.msra.mxu3 %v185_v52  ;;  %v324_v38 = vld [vmem:[#allocation5 + $0x370] sm:$0xff] }
  0x32   :  { %253 = vmatpush.msrb.mxu0 %v231_v5  ;;  %289 = vmatpush.msrb.mxu1 %v281_v18 }
  0x33   :  { %173 = vmatpush.msra.mxu2 %v139_v39  ;;  %214 = vmatpush.msra.mxu3 %v184_v53  ;;  %v323_v39 = vld [vmem:[#allocation5 + $0x368] sm:$0xff] }
  0x34   :  { %254 = vmatpush.msrb.mxu0 %v230_v6  ;;  %290 = vmatpush.msrb.mxu1 %v280_v19 }
  0x35   :  { %174 = vmatpush.msra.mxu2 %v138_v40  ;;  %215 = vmatpush.msra.mxu3 %v183_v58  ;;  %v322_v40 = vld [vmem:[#allocation5 + $0x360] sm:$0xff] }
  0x36   :  { %255 = vmatpush.msrb.mxu0 %v229_v7  ;;  %291 = vmatpush.msrb.mxu1 %v279_v20 }
  0x37   :  { %216 = vmatpush.msra.mxu3 %v182_v59 }
  0x38   :  { %256 = vmatpush.msrb.mxu0 %v228_v8  ;;  %292 = vmatpush.msrb.mxu1 %v278_v21 }
  0x39   :  { %217 = vmatpush.msra.mxu3 %v181_v60 }
  0x3a   :  { %257 = vmatpush.msrb.mxu0 %v227_v9  ;;  %293 = vmatpush.msrb.mxu1 %v277_v22 }
  0x3c   :  { %258 = vmatpush.msrb.mxu0 %v226_v14  ;;  %294 = vmatpush.msrb.mxu1 %v276_v23 }
  0x3e   :  { %259 = vmatpush.msrb.mxu0 %v225_v15  ;;  %295 = vmatpush.msrb.mxu1 %v275_v24 }
  0x40   :  { %260 = vmatpush.msrb.mxu0 %v224_v16  ;;  %296 = vmatpush.msrb.mxu1 %v274_v25 }
  0x42   :  { %297 = vmatpush.msrb.mxu1 %v273_v26 }
  0x44   :  { %298 = vmatpush.msrb.mxu1 %v272_v27 }
  0x46   :  { %299 = vmatpush.msrb.mxu1 %v271_v28 }
  0x48   :  { %300 = vmatpush.msrb.mxu1 %v270_v29 }
  0x93   :  { %v90_v35 = vpop.f32.mrf.mxu0 }
  0x94   :  { %v91_v36 = vadd.f32 %v379_v34, %v90_v35  ;;  %v269_v34 = vld [vmem:[#allocation5 + $0x290] sm:$0xff]  ;;  %v268_v35 = vld [vmem:[#allocation5 + $0x288] sm:$0xff] }
  0x95   :  { %301 = vmatpush.msrb.mxu1 %v269_v34 }
  0x96   :  { %v93_v37 = vmax.f32 %v91_v36, 0.0  ;;  %v267_v36 = vld [vmem:[#allocation5 + $0x280] sm:$0xff] }
  0x97   :  { %302 = vmatpush.msrb.mxu1 %v268_v35 }
  0x98   :  { %132 = vmatmul.f32.vlgmr.msra.gmra.mxu1 %v93_v37  ;;  %v325_v37 = vld [vmem:[#allocation5 + $0x378] sm:$0xff] }
  0x99   :  { %303 = vmatpush.msrb.mxu1 %v267_v36  ;;  %331 = vmatpush.msrb.mxu2 %v325_v37 }
  0x9b   :  { %332 = vmatpush.msrb.mxu2 %v324_v38 }
  0x9d   :  { %333 = vmatpush.msrb.mxu2 %v323_v39 }
  0x9f   :  { %334 = vmatpush.msrb.mxu2 %v322_v40 }
  0xa1   :  { %335 = vmatpush.msrb.mxu2 %v321_v41 }
  0xa3   :  { %336 = vmatpush.msrb.mxu2 %v320_v42 }
  0xa5   :  { %337 = vmatpush.msrb.mxu2 %v319_v43 }
  0xa7   :  { %338 = vmatpush.msrb.mxu2 %v318_v44 }
  0xa9   :  { %339 = vmatpush.msrb.mxu2 %v317_v45 }
  0xab   :  { %340 = vmatpush.msrb.mxu2 %v316_v46 }
  0xad   :  { %341 = vmatpush.msrb.mxu2 %v315_v47 }
  0xaf   :  { %342 = vmatpush.msrb.mxu2 %v314_v48 }
  0xb1   :  { %343 = vmatpush.msrb.mxu2 %v313_v49 }
 0x115   :  { %v133_v55 = vpop.f32.mrf.mxu1 }
 0x116   :  { %v134_v56 = vadd.f32 %v380_v54, %v133_v55  ;;  %v312_v54 = vld [vmem:[#allocation5 + $0x310] sm:$0xff]  ;;  %v311_v55 = vld [vmem:[#allocation5 + $0x308] sm:$0xff] }
 0x117   :  { %344 = vmatpush.msrb.mxu2 %v312_v54 }
 0x118   :  { %v136_v57 = vmax.f32 %v134_v56, 0.0  ;;  %v310_v56 = vld [vmem:[#allocation5 + $0x300] sm:$0xff] }
 0x119   :  { %345 = vmatpush.msrb.mxu2 %v311_v55 }
 0x11a   :  { %175 = vmatmul.f32.vlgmr.msra.gmra.mxu2 %v136_v57  ;;  %v384_v57 = vld [vmem:[#allocation7 + $0x5] ss:$0 sm:$0xff] }
 0x11b   :  { %346 = vmatpush.msrb.mxu2 %v310_v56 }
 0x19d   :  { %v176_v11 = vpop.f32.mrf.mxu2 }
 0x19e   :  { %v177_v12 = vadd.f32 %v381_v10, %v176_v11 }
 0x1a0   :  { %v179_v13 = vmax.f32 %v177_v12, 0.0 }
 0x1a2   :  { %218 = vmatmul.f32.vlgmr.msra.gmra.mxu3 %v179_v13 }
 0x225   :  { %v219_v31 = vpop.f32.mrf.mxu3 }
 0x226   :  { %v220_v32 = vadd.f32 %v382_v30, %v219_v31 }
 0x228   :  { %v222_v33 = vmax.f32 %v220_v32, 0.0 }
 0x22a   :  { %261 = vmatmul.f32.vlgmr.msrb.gmra.mxu0 %v222_v33 }
 0x2a7   :  { %v262_v51 = vpop.f32.mrf.mxu0 }
 0x2a8   :  { %v263_v52 = vadd.f32 %v383_v50, %v262_v51 }
 0x2aa   :  { %v265_v53 = vmax.f32 %v263_v52, 0.0 }
 0x2ac   :  { %304 = vmatmul.f32.vlgmr.msrb.gmra.mxu1 %v265_v53 }
 0x329   :  { %v305_v58 = vpop.f32.mrf.mxu1 }
 0x32a   :  { %v306_v59 = vadd.f32 %v384_v57, %v305_v58 }
 0x32c   :  { %v308_v60 = vmax.f32 %v306_v59, 0.0 }
 0x32e   :  { %347 = vmatmul.f32.vlgmr.msrb.gmra.mxu2 %v308_v60 }
 0x3b1   :  { %v348_v62 = vpop.f32.mrf.mxu2 }
 0x3b2   :  { %v349_v63 = vadd.f32 %v385_v61, %v348_v62 }
 0x3b4   :  { %351 = vst [vmem:[#allocation8] sm:$0xff] %v349_v63 }
 0x3b5   :  { %362 = dma.vmem_to_hbm [thread:$0]  %s358_s2, 128, %s360_s5, [#allocation4]  }
 0x3b6   :  { %486 = dma.done.wait [#allocation4], 128  }
 0x3b7   :  { %487 = vsyncadd [#allocation4], 4294967168 }
 0x3b8   :  { %367 = vsyncpa [#allocation3], 1 }
 0x3b9   :  { %368 = vsyncpa [#allocation6], 1 }
 0x3ba   :  { %369 = vsyncpa [#allocation4], 1 }

</bundles_post_ra>
